<compile_context>
chip_gen: v7x
topology: tpu7x:2x2x1
jax: 0.10.0
libtpu: 0.0.40
codegen_flags: <defaults>
</compile_context>

<pallas_src>
import functools

import jax
import jax.numpy as jnp
from jax.experimental import pallas as pl
from jax.experimental.pallas import tpu as pltpu


def _round_up(x, m):
    return ((x + m - 1) // m) * m


def _detect_num_cores():
    """Best-effort TensorCore count per device (v7x has 2; v5e/v6e have 1)."""
    try:
        dev = jax.devices()[0]
        kind = str(getattr(dev, "device_kind", "")).lower()
        if "v7" in kind:
            return 2
        nc = getattr(dev, "num_cores", None)
        if isinstance(nc, int) and 1 <= nc <= 8:
            return nc
    except Exception:
        pass
    return 1


def _arnn_kernel(x_ref, h_ref, w1_ref, b1_ref, wih_ref, whh_ref,
                 bgi_ref, bgh_ref, w2_ref, b2_ref, q_ref, hh_ref, gi_scr,
                 *, actions_num, hidden_dim, hidden_pad, ba_tile, compute_dtype):
    f32 = jnp.float32
    H, Hp, A, T = hidden_dim, hidden_pad, actions_num, ba_tile

    # Hidden state in f32 (full precision for the z*h term); bf16 only as the
    # W_hh matmul operand.  gh is computed ONCE per (b, a)-row tile and reused
    # by every action of that tile (r/z input biases pre-folded into bgh).
    h32 = h_ref[...]                                             # (T, H) f32
    gh = jnp.dot(h32.astype(compute_dtype), whh_ref[...],
                 preferred_element_type=f32) + bgh_ref[...]      # (T, 3Hp)
    gh_r = gh[:, 0:H]
    gh_z = gh[:, Hp:Hp + H]
    gh_n = gh[:, 2 * Hp:2 * Hp + H]

    # fc1 + ReLU and the input-side gate matmul, batched over ALL actions:
    # two large-M matmuls per grid step instead of 2*actions_num small ones.
    e = x_ref.shape[2]
    x_all = x_ref[...].reshape(A * T, e)                         # collapse (A, T) rows
    xh = jnp.dot(x_all, w1_ref[...], preferred_element_type=f32) + b1_ref[...]
    xh = jnp.maximum(xh, 0.0).astype(compute_dtype)              # (A*T, H)
    gi_scr[...] = jnp.dot(xh, wih_ref[...],
                          preferred_element_type=f32) + bgi_ref[...]   # (A*T, 3Hp)

    # Per-action gate math: VPU/EUP only, on contiguous (T, H) sublane slices.
    def gate_body(act, carry):
        off = act * T
        if hasattr(off, "dtype"):                # traced index -> alignment hint
            off = pl.multiple_of(off, T)
        gi_r = gi_scr[pl.ds(off, T), 0:H]
        gi_z = gi_scr[pl.ds(off, T), Hp:Hp + H]
        gi_n = gi_scr[pl.ds(off, T), 2 * Hp:2 * Hp + H]
        r = jax.nn.sigmoid(gi_r + gh_r)
        z = jax.nn.sigmoid(gi_z + gh_z)
        n = jnp.tanh(gi_n + r * gh_n)
        hh_ref[act] = ((1.0 - z) * n + z * h32).astype(hh_ref.dtype)
        return carry

    jax.lax.fori_loop(0, A, gate_body, 0, unroll=True)

    # TODO(synk): optional args.use_layer_norm branch not implemented (default False).

    # fc2 (output width 1): VPU multiply + lane reduce over H (no width-1 MXU
    # matmul); single lane-dense (A, T) store for q.
    hh_all = hh_ref[...].astype(f32)                             # (A, T, H) from VMEM
    w2row = w2_ref[...].reshape(1, 1, H)
    q_ref[...] = jnp.sum(hh_all * w2row, axis=-1) + b2_ref[0]


def init_arnn_params(key, input_shape, rnn_hidden_dim):
    """Deterministic PyTorch-style uniform init; weights stored pre-transposed (in, out)."""
    E, H = input_shape, rnn_hidden_dim
    ks = jax.random.split(key, 8)
    u = lambda k, shape, bound: jax.random.uniform(k, shape, jnp.float32, -bound, bound)
    be = 1.0 / float(E) ** 0.5
    bh = 1.0 / float(H) ** 0.5
    return {
        "w1": u(ks[0], (E, H), be),          # fc1: Linear(E, H)
        "b1": u(ks[1], (1, H), be),
        "w_ih": u(ks[2], (H, 3 * H), bh),    # GRUCell, stored transposed (H, 3H)
        "w_hh": u(ks[3], (H, 3 * H), bh),
        "b_ih": u(ks[4], (1, 3 * H), bh),
        "b_hh": u(ks[5], (1, 3 * H), bh),
        "w2": u(ks[6], (H, 1), bh),          # fc2: Linear(H, 1)
        "b2": u(ks[7], (1, 1), bh),
    }


def _pad_gate_cols(w, H, Hp):
    """(rows, 3H) -> (rows, 3Hp): zero-pad each of the r/z/n gate blocks to Hp lanes."""
    parts = [jnp.pad(w[:, g * H:(g + 1) * H], ((0, 0), (0, Hp - H))) for g in range(3)]
    return jnp.concatenate(parts, axis=1)


def arnn_forward_pallas(params, inputs, hidden_state, hidden_index=None,
                        ba_tile=256, compute_dtype=jnp.bfloat16,
                        hh_dtype=jnp.float32, num_cores=None,
                        vmem_budget_bytes=40 * 1024 * 1024):
    """Pallas implementation of ARNNAgent.forward.

    inputs:       (b, a, actions_num, e)  float32
    hidden_state: (b, a, H)               float32
    returns (q: (b, a, actions_num), hh) matching the PyTorch module.
    hh_dtype can be set to bfloat16 to halve the hh writeback if the caller
    tolerates bf16 recurrent state (kept f32 by default for fidelity).
    """
    b, a, actions_num, e = inputs.shape
    A = actions_num
    H = params["w1"].shape[1]
    Hp = _round_up(H, 128)                 # per-gate lane alignment for clean slicing
    BA = b * a
    f32 = jnp.float32
    if num_cores is None:
        num_cores = _detect_num_cores()

    hh_b = jnp.dtype(hh_dtype).itemsize
    cd_b = jnp.dtype(compute_dtype).itemsize

    def vmem_bytes(T):
        lane = lambda n: _round_up(n, 128)
        byt = 2 * A * T * lane(e) * cd_b                     # x block (double-buffered)
        byt += 2 * T * lane(H) * 4                           # h block (f32)
        byt += 2 * A * T * lane(H) * hh_b                    # hh block
        byt += 2 * _round_up(A, 8) * lane(T) * 4             # q block
        byt += A * T * 3 * Hp * 4                            # gi scratch (f32)
        byt += 2 * (_round_up(e, 8) * lane(H) + 2 * _round_up(H, 8) * 3 * Hp) * cd_b
        byt += 2 * (3 * lane(H) + 2 * 3 * Hp) * 4            # biases / w2 (f32)
        return byt

    # --- tile the (batch*agents) axis ------------------------------------
    cap = max(8, int(ba_tile))
    while cap > 128 and vmem_bytes(cap) > vmem_budget_bytes:   # v7x VMEM budget
        cap = max(128, ((cap - 128) // 128) * 128)

    BA8 = _round_up(BA, 8)
    if BA8 <= cap and (num_cores <= 1 or BA8 <= 128):
        ba_tile = BA8                          # one maximal tile (serial grid on 1 TC)
    else:
        # Multiple tiles: 128-align so every block (incl. q's ba_tile lane dim)
        # stays (8,128)-clean, and target one balanced tile per TensorCore.
        t = _round_up(-(-BA // max(1, num_cores)), 128)
        ba_tile = max(128, min(t, max(128, (cap // 128) * 128)))
    BAp = _round_up(BA, ba_tile)
    num_tiles = BAp // ba_tile

    # --- input prep (layout plumbing only) --------------------------------
    # x: actions leading; bf16 cast fused with the same transpose pass.
    x3 = jnp.transpose(inputs.reshape(BA, A, e), (1, 0, 2)).astype(compute_dtype)
    # h: stays f32, never broadcast over actions in HBM.
    h2 = hidden_state.reshape(BA, H).astype(f32)
    if BAp != BA:
        x3 = jnp.pad(x3, ((0, 0), (0, BAp - BA), (0, 0)))
        h2 = jnp.pad(h2, ((0, BAp - BA), (0, 0)))

    # --- weight prep (once per call) ---------------------------------------
    w1 = params["w1"].astype(compute_dtype)                            # (e, H)
    b1 = params["b1"].astype(f32)                                      # (1, H)
    w_ih = _pad_gate_cols(params["w_ih"], H, Hp).astype(compute_dtype) # (H, 3Hp)
    w_hh = _pad_gate_cols(params["w_hh"], H, Hp).astype(compute_dtype) # (H, 3Hp)
    b_ihp = _pad_gate_cols(params["b_ih"], H, Hp).astype(f32)          # (1, 3Hp)
    b_hhp = _pad_gate_cols(params["b_hh"], H, Hp).astype(f32)
    # Fold r/z input biases into the once-per-tile hidden-side bias; keep only
    # b_in on the gi side (b_hn must remain inside the r*(...) term).
    n_mask = jnp.concatenate([jnp.zeros((1, 2 * Hp), f32), jnp.ones((1, Hp), f32)], axis=1)
    b_gi = b_ihp * n_mask
    b_gh = b_hhp + b_ihp * (1.0 - n_mask)
    w2 = params["w2"].reshape(1, H).astype(f32)
    b2 = params["b2"].reshape(1).astype(f32)

    kernel = functools.partial(_arnn_kernel, actions_num=A, hidden_dim=H,
                               hidden_pad=Hp, ba_tile=ba_tile,
                               compute_dtype=compute_dtype)

    rep = lambda s: pl.BlockSpec(s, lambda i: (0,) * len(s))   # replicated weights
    vmem_limit = int(min(vmem_bytes(ba_tile) + (16 << 20), 48 << 20))

    q_pad, hh_pad = pl.pallas_call(
        kernel,
        out_shape=(jax.ShapeDtypeStruct((A, BAp), f32),
                   jax.ShapeDtypeStruct((A, BAp, H), hh_dtype)),
        grid=(num_tiles,),
        in_specs=[
            pl.BlockSpec((A, ba_tile, e), lambda i: (0, i, 0)),    # x (actions leading)
            pl.BlockSpec((ba_tile, H), lambda i: (i, 0)),          # h (f32, un-broadcast)
            rep(w1.shape), rep(b1.shape),                          # fc1
            rep(w_ih.shape), rep(w_hh.shape),                      # fused GRU gate weights
            rep(b_gi.shape), rep(b_gh.shape),                      # folded gate biases
            rep(w2.shape),                                         # fc2 weight row
            pl.BlockSpec(memory_space=pltpu.MemorySpace.SMEM),     # fc2 bias scalar
        ],
        out_specs=(pl.BlockSpec((A, ba_tile), lambda i: (0, i)),        # q lane-dense
                   pl.BlockSpec((A, ba_tile, H), lambda i: (0, i, 0))), # hh unpadded
        scratch_shapes=[pltpu.VMEM((A * ba_tile, 3 * Hp), jnp.float32)],
        compiler_params=pltpu.CompilerParams(
            dimension_semantics=("parallel",),
            vmem_limit_bytes=vmem_limit),
    )(x3, h2, w1, b1, w_ih, w_hh, b_gi, b_gh, w2, b2)

    q = jnp.transpose(q_pad[:, :BA], (1, 0)).reshape(b, a, A)

    if hidden_index is not None:
        # Matches hh[arange(b), arange(a), hidden_index].squeeze(2); the select
        # runs directly in the (A, BA, H) layout (no full hh transpose needed).
        idx = hidden_index.reshape(1, BA, 1).astype(jnp.int32)
        hh_sel = jnp.take_along_axis(hh_pad[:, :BA, :], idx, axis=0)[0]
        return q, hh_sel.reshape(b, a, H)

    hh = jnp.transpose(hh_pad[:, :BA, :], (1, 0, 2)).reshape(b, a, A, H)
    return q, hh


def arnn_forward_ref(params, inputs, hidden_state):
    """Pure-JAX f32 reference for correctness checking."""
    b, a, actions_num, e = inputs.shape
    H = params["w1"].shape[1]
    x = inputs.reshape(-1, e)
    h = jnp.broadcast_to(hidden_state[:, :, None, :], (b, a, actions_num, H)).reshape(-1, H)
    x = jnp.maximum(x @ params["w1"] + params["b1"], 0.0)
    gi = x @ params["w_ih"] + params["b_ih"]
    gh = h @ params["w_hh"] + params["b_hh"]
    r = jax.nn.sigmoid(gi[:, :H] + gh[:, :H])
    z = jax.nn.sigmoid(gi[:, H:2 * H] + gh[:, H:2 * H])
    n = jnp.tanh(gi[:, 2 * H:] + r * gh[:, 2 * H:])
    hh = (1.0 - z) * n + z * h
    q = hh @ params["w2"] + params["b2"]
    return q.reshape(b, a, actions_num), hh.reshape(b, a, actions_num, H)


if __name__ == "__main__":
    # Small shapes implied by the module: (b, a, actions_num, e), hidden dim H.
    b, a, actions_num, e, H = 2, 2, 4, 16, 32
    key = jax.random.PRNGKey(0)
    k_p, k_x, k_h = jax.random.split(key, 3)

    params = init_arnn_params(k_p, input_shape=e, rnn_hidden_dim=H)
    inputs = jax.random.normal(k_x, (b, a, actions_num, e), jnp.float32)
    hidden_state = jax.random.normal(k_h, (b, a, H), jnp.float32)

    q, hh = arnn_forward_pallas(params, inputs, hidden_state)
    q = jax.block_until_ready(q)
    hh = jax.block_until_ready(hh)

    q_ref, hh_ref = arnn_forward_ref(params, inputs, hidden_state)
    assert q.shape == (b, a, actions_num) and hh.shape == (b, a, actions_num, H)
    # bf16 matmul operands vs f32 reference -> relaxed tolerance.
    assert jnp.allclose(q, q_ref, atol=5e-2, rtol=5e-2)
    assert jnp.allclose(hh, hh_ref, atol=5e-2, rtol=5e-2)

    # hidden_index branch (glue indexing path).
    hidden_index = jnp.zeros((b, a, 1), jnp.int32)
    q2, hh_sel = arnn_forward_pallas(params, inputs, hidden_state, hidden_index=hidden_index)
    jax.block_until_ready(hh_sel)
    assert q2.shape == (b, a, actions_num) and hh_sel.shape == (b, a, H)
    assert jnp.allclose(hh_sel, hh_ref[:, :, 0, :], atol=5e-2, rtol=5e-2)

    # Larger config exercising the multi-tile (128-aligned) grid path.
    b2_, a2_, A2, e2, H2 = 8, 40, 6, 24, 64
    kp2, kx2, kh2 = jax.random.split(jax.random.PRNGKey(1), 3)
    params2 = init_arnn_params(kp2, input_shape=e2, rnn_hidden_dim=H2)
    inputs2 = jax.random.normal(kx2, (b2_, a2_, A2, e2), jnp.float32)
    hidden2 = jax.random.normal(kh2, (b2_, a2_, H2), jnp.float32)
    q3, hh3 = arnn_forward_pallas(params2, inputs2, hidden2)
    jax.block_until_ready(q3)
    q3_ref, hh3_ref = arnn_forward_ref(params2, inputs2, hidden2)
    assert jnp.allclose(q3, q3_ref, atol=5e-2, rtol=5e-2)
    assert jnp.allclose(hh3, hh3_ref, atol=5e-2, rtol=5e-2)

    print("KERNEL_OK")
</pallas_src>

<mosaic_0001>
module attributes {stable_mosaic.version = 11 : i64} {
  func.func @_arnn_kernel(%arg0: i32, %arg1: memref<4x8x16xbf16, #tpu.memory_space<vmem>>, %arg2: memref<8x32xf32, #tpu.memory_space<vmem>>, %arg3: memref<16x32xbf16, #tpu.memory_space<vmem>>, %arg4: memref<1x32xf32, #tpu.memory_space<vmem>>, %arg5: memref<32x384xbf16, #tpu.memory_space<vmem>>, %arg6: memref<32x384xbf16, #tpu.memory_space<vmem>>, %arg7: memref<1x384xf32, #tpu.memory_space<vmem>>, %arg8: memref<1x384xf32, #tpu.memory_space<vmem>>, %arg9: memref<1x32xf32, #tpu.memory_space<vmem>>, %arg10: memref<1xf32, #tpu.memory_space<smem>>, %arg11: memref<4x8xf32, #tpu.memory_space<vmem>>, %arg12: memref<4x8x32xf32, #tpu.memory_space<vmem>>, %arg13: memref<32x384xf32, #tpu.memory_space<vmem>>) attributes {dimension_semantics = [#tpu.dimension_semantics<parallel>], iteration_bounds = array<i64: 1>, scalar_prefetch = 0 : i64, scratch_operands = 1 : i64, tpu.core_type = #tpu.core_type<tc>, window_params = [{transform_indices = @transform_0, window_bounds = array<i64: 4, 8, 16>}, {transform_indices = @transform_1, window_bounds = array<i64: 8, 32>}, {pipeline_mode = #tpu.pipeline_mode<synchronous>, transform_indices = @transform_2, window_bounds = array<i64: 16, 32>}, {pipeline_mode = #tpu.pipeline_mode<synchronous>, transform_indices = @transform_3, window_bounds = array<i64: 1, 32>}, {pipeline_mode = #tpu.pipeline_mode<synchronous>, transform_indices = @transform_4, window_bounds = array<i64: 32, 384>}, {pipeline_mode = #tpu.pipeline_mode<synchronous>, transform_indices = @transform_5, window_bounds = array<i64: 32, 384>}, {pipeline_mode = #tpu.pipeline_mode<synchronous>, transform_indices = @transform_6, window_bounds = array<i64: 1, 384>}, {pipeline_mode = #tpu.pipeline_mode<synchronous>, transform_indices = @transform_7, window_bounds = array<i64: 1, 384>}, {pipeline_mode = #tpu.pipeline_mode<synchronous>, transform_indices = @transform_8, window_bounds = array<i64: 1, 32>}, {transform_indices = @transform_9, window_bounds = array<i64: 1>}, {transform_indices = @transform_10, window_bounds = array<i64: 4, 8>}, {transform_indices = @transform_11, window_bounds = array<i64: 4, 8, 32>}]} {
    %c0 = arith.constant 0 : index
    %c0_0 = arith.constant 0 : index
    %0 = vector.load %arg2[%c0, %c0_0] : memref<8x32xf32, #tpu.memory_space<vmem>>, vector<8x32xf32>
    %1 = arith.truncf %0 : vector<8x32xf32> to vector<8x32xbf16>
    %c0_1 = arith.constant 0 : index
    %c0_2 = arith.constant 0 : index
    %2 = vector.load %arg6[%c0_1, %c0_2] : memref<32x384xbf16, #tpu.memory_space<vmem>>, vector<32x384xbf16>
    %cst = arith.constant dense<0.000000e+00> : vector<8x384xf32>
    %3 = tpu.matmul %1, %2, %cst {dimension_numbers = #tpu.dot_dimension_numbers<[1], [0], [0], [1], [0, 0, 1, 1], [], []>} : vector<8x32xbf16>, vector<32x384xbf16>, vector<8x384xf32> -> vector<8x384xf32>
    %c0_3 = arith.constant 0 : index
    %c0_4 = arith.constant 0 : index
    %4 = vector.load %arg8[%c0_3, %c0_4] : memref<1x384xf32, #tpu.memory_space<vmem>>, vector<1x384xf32>
    %5 = vector.broadcast %4 : vector<1x384xf32> to vector<8x384xf32>
    %6 = arith.addf %3, %5 : vector<8x384xf32>
    %7 = vector.extract_strided_slice %6 {offsets = [0, 0], sizes = [8, 32], strides = [1, 1]} : vector<8x384xf32> to vector<8x32xf32>
    %8 = vector.extract_strided_slice %6 {offsets = [0, 128], sizes = [8, 32], strides = [1, 1]} : vector<8x384xf32> to vector<8x32xf32>
    %9 = vector.extract_strided_slice %6 {offsets = [0, 256], sizes = [8, 32], strides = [1, 1]} : vector<8x384xf32> to vector<8x32xf32>
    %c0_5 = arith.constant 0 : index
    %c0_6 = arith.constant 0 : index
    %c0_7 = arith.constant 0 : index
    %10 = vector.load %arg1[%c0_5, %c0_6, %c0_7] : memref<4x8x16xbf16, #tpu.memory_space<vmem>>, vector<4x8x16xbf16>
    %11 = vector.shape_cast %10 : vector<4x8x16xbf16> to vector<32x16xbf16>
    %c0_8 = arith.constant 0 : index
    %c0_9 = arith.constant 0 : index
    %12 = vector.load %arg3[%c0_8, %c0_9] : memref<16x32xbf16, #tpu.memory_space<vmem>>, vector<16x32xbf16>
    %cst_10 = arith.constant dense<0.000000e+00> : vector<32x32xf32>
    %13 = tpu.matmul %11, %12, %cst_10 {dimension_numbers = #tpu.dot_dimension_numbers<[1], [0], [0], [1], [0, 0, 1, 1], [], []>} : vector<32x16xbf16>, vector<16x32xbf16>, vector<32x32xf32> -> vector<32x32xf32>
    %c0_11 = arith.constant 0 : index
    %c0_12 = arith.constant 0 : index
    %14 = vector.load %arg4[%c0_11, %c0_12] : memref<1x32xf32, #tpu.memory_space<vmem>>, vector<1x32xf32>
    %15 = vector.broadcast %14 : vector<1x32xf32> to vector<32x32xf32>
    %16 = arith.addf %13, %15 : vector<32x32xf32>
    %cst_13 = arith.constant 0.000000e+00 : f32
    %17 = vector.broadcast %cst_13 : f32 to vector<32x32xf32>
    %18 = arith.maximumf %16, %17 : vector<32x32xf32>
    %19 = arith.truncf %18 : vector<32x32xf32> to vector<32x32xbf16>
    %c0_14 = arith.constant 0 : index
    %c0_15 = arith.constant 0 : index
    %20 = vector.load %arg5[%c0_14, %c0_15] : memref<32x384xbf16, #tpu.memory_space<vmem>>, vector<32x384xbf16>
    %cst_16 = arith.constant dense<0.000000e+00> : vector<32x384xf32>
    %21 = tpu.matmul %19, %20, %cst_16 {dimension_numbers = #tpu.dot_dimension_numbers<[1], [0], [0], [1], [0, 0, 1, 1], [], []>} : vector<32x32xbf16>, vector<32x384xbf16>, vector<32x384xf32> -> vector<32x384xf32>
    %c0_17 = arith.constant 0 : index
    %c0_18 = arith.constant 0 : index
    %22 = vector.load %arg7[%c0_17, %c0_18] : memref<1x384xf32, #tpu.memory_space<vmem>>, vector<1x384xf32>
    %23 = vector.broadcast %22 : vector<1x384xf32> to vector<32x384xf32>
    %24 = arith.addf %21, %23 : vector<32x384xf32>
    %c0_19 = arith.constant 0 : index
    %c0_20 = arith.constant 0 : index
    %25 = vector.load %arg13[%c0_19, %c0_20] : memref<32x384xf32, #tpu.memory_space<vmem>>, vector<32x384xf32>
    tpu.vector_store %arg13[%c0_19, %c0_20], %24 {strides = array<i32>} : memref<32x384xf32, #tpu.memory_space<vmem>>, vector<32x384xf32>,
    %c0_i32 = arith.constant 0 : i32
    %c8_i32 = arith.constant 8 : i32
    %26 = arith.muli %c0_i32, %c8_i32 : i32
    %27 = tpu.assume_multiple %26, 8 : i32
    %28 = arith.index_cast %27 : i32 to index
    %c0_21 = arith.constant 0 : index
    %29 = vector.load %arg13[%28, %c0_21] : memref<32x384xf32, #tpu.memory_space<vmem>>, vector<8x32xf32>
    %30 = arith.index_cast %27 : i32 to index
    %c128 = arith.constant 128 : index
    %31 = vector.load %arg13[%30, %c128] : memref<32x384xf32, #tpu.memory_space<vmem>>, vector<8x32xf32>
    %32 = arith.index_cast %27 : i32 to index
    %c256 = arith.constant 256 : index
    %33 = vector.load %arg13[%32, %c256] : memref<32x384xf32, #tpu.memory_space<vmem>>, vector<8x32xf32>
    %34 = arith.addf %29, %7 : vector<8x32xf32>
    %35 = arith.negf %34 : vector<8x32xf32>
    %36 = math.exp %35 : vector<8x32xf32>
    %cst_22 = arith.constant 1.000000e+00 : f32
    %37 = vector.broadcast %cst_22 : f32 to vector<8x32xf32>
    %38 = arith.addf %37, %36 : vector<8x32xf32>
    %39 = arith.divf %37, %38 : vector<8x32xf32>
    %40 = arith.addf %31, %8 : vector<8x32xf32>
    %41 = arith.negf %40 : vector<8x32xf32>
    %42 = math.exp %41 : vector<8x32xf32>
    %cst_23 = arith.constant 1.000000e+00 : f32
    %43 = vector.broadcast %cst_23 : f32 to vector<8x32xf32>
    %44 = arith.addf %43, %42 : vector<8x32xf32>
    %45 = arith.divf %43, %44 : vector<8x32xf32>
    %46 = arith.mulf %39, %9 : vector<8x32xf32>
    %47 = arith.addf %33, %46 : vector<8x32xf32>
    %48 = math.tanh %47 : vector<8x32xf32>
    %cst_24 = arith.constant 1.000000e+00 : f32
    %49 = vector.broadcast %cst_24 : f32 to vector<8x32xf32>
    %50 = arith.subf %49, %45 : vector<8x32xf32>
    %51 = arith.mulf %50, %48 : vector<8x32xf32>
    %52 = arith.mulf %45, %0 : vector<8x32xf32>
    %53 = arith.addf %51, %52 : vector<8x32xf32>
    %54 = arith.index_cast %c0_i32 : i32 to index
    %c0_25 = arith.constant 0 : index
    %c0_26 = arith.constant 0 : index
    %55 = vector.load %arg12[%54, %c0_25, %c0_26] : memref<4x8x32xf32, #tpu.memory_space<vmem>>, vector<1x8x32xf32>
    %56 = vector.shape_cast %55 : vector<1x8x32xf32> to vector<8x32xf32>
    %57 = vector.shape_cast %53 : vector<8x32xf32> to vector<1x8x32xf32>
    tpu.vector_store %arg12[%54, %c0_25, %c0_26], %57 {strides = array<i32>} : memref<4x8x32xf32, #tpu.memory_space<vmem>>, vector<1x8x32xf32>,
    %c1_i32 = arith.constant 1 : i32
    %c8_i32_27 = arith.constant 8 : i32
    %58 = arith.muli %c1_i32, %c8_i32_27 : i32
    %59 = tpu.assume_multiple %58, 8 : i32
    %60 = arith.index_cast %59 : i32 to index
    %c0_28 = arith.constant 0 : index
    %61 = vector.load %arg13[%60, %c0_28] : memref<32x384xf32, #tpu.memory_space<vmem>>, vector<8x32xf32>
    %62 = arith.index_cast %59 : i32 to index
    %c128_29 = arith.constant 128 : index
    %63 = vector.load %arg13[%62, %c128_29] : memref<32x384xf32, #tpu.memory_space<vmem>>, vector<8x32xf32>
    %64 = arith.index_cast %59 : i32 to index
    %c256_30 = arith.constant 256 : index
    %65 = vector.load %arg13[%64, %c256_30] : memref<32x384xf32, #tpu.memory_space<vmem>>, vector<8x32xf32>
    %66 = arith.addf %61, %7 : vector<8x32xf32>
    %67 = arith.negf %66 : vector<8x32xf32>
    %68 = math.exp %67 : vector<8x32xf32>
    %cst_31 = arith.constant 1.000000e+00 : f32
    %69 = vector.broadcast %cst_31 : f32 to vector<8x32xf32>
    %70 = arith.addf %69, %68 : vector<8x32xf32>
    %71 = arith.divf %69, %70 : vector<8x32xf32>
    %72 = arith.addf %63, %8 : vector<8x32xf32>
    %73 = arith.negf %72 : vector<8x32xf32>
    %74 = math.exp %73 : vector<8x32xf32>
    %cst_32 = arith.constant 1.000000e+00 : f32
    %75 = vector.broadcast %cst_32 : f32 to vector<8x32xf32>
    %76 = arith.addf %75, %74 : vector<8x32xf32>
    %77 = arith.divf %75, %76 : vector<8x32xf32>
    %78 = arith.mulf %71, %9 : vector<8x32xf32>
    %79 = arith.addf %65, %78 : vector<8x32xf32>
    %80 = math.tanh %79 : vector<8x32xf32>
    %cst_33 = arith.constant 1.000000e+00 : f32
    %81 = vector.broadcast %cst_33 : f32 to vector<8x32xf32>
    %82 = arith.subf %81, %77 : vector<8x32xf32>
    %83 = arith.mulf %82, %80 : vector<8x32xf32>
    %84 = arith.mulf %77, %0 : vector<8x32xf32>
    %85 = arith.addf %83, %84 : vector<8x32xf32>
    %86 = arith.index_cast %c1_i32 : i32 to index
    %c0_34 = arith.constant 0 : index
    %c0_35 = arith.constant 0 : index
    %87 = vector.load %arg12[%86, %c0_34, %c0_35] : memref<4x8x32xf32, #tpu.memory_space<vmem>>, vector<1x8x32xf32>
    %88 = vector.shape_cast %87 : vector<1x8x32xf32> to vector<8x32xf32>
    %89 = vector.shape_cast %85 : vector<8x32xf32> to vector<1x8x32xf32>
    tpu.vector_store %arg12[%86, %c0_34, %c0_35], %89 {strides = array<i32>} : memref<4x8x32xf32, #tpu.memory_space<vmem>>, vector<1x8x32xf32>,
    %c2_i32 = arith.constant 2 : i32
    %c8_i32_36 = arith.constant 8 : i32
    %90 = arith.muli %c2_i32, %c8_i32_36 : i32
    %91 = tpu.assume_multiple %90, 8 : i32
    %92 = arith.index_cast %91 : i32 to index
    %c0_37 = arith.constant 0 : index
    %93 = vector.load %arg13[%92, %c0_37] : memref<32x384xf32, #tpu.memory_space<vmem>>, vector<8x32xf32>
    %94 = arith.index_cast %91 : i32 to index
    %c128_38 = arith.constant 128 : index
    %95 = vector.load %arg13[%94, %c128_38] : memref<32x384xf32, #tpu.memory_space<vmem>>, vector<8x32xf32>
    %96 = arith.index_cast %91 : i32 to index
    %c256_39 = arith.constant 256 : index
    %97 = vector.load %arg13[%96, %c256_39] : memref<32x384xf32, #tpu.memory_space<vmem>>, vector<8x32xf32>
    %98 = arith.addf %93, %7 : vector<8x32xf32>
    %99 = arith.negf %98 : vector<8x32xf32>
    %100 = math.exp %99 : vector<8x32xf32>
    %cst_40 = arith.constant 1.000000e+00 : f32
    %101 = vector.broadcast %cst_40 : f32 to vector<8x32xf32>
    %102 = arith.addf %101, %100 : vector<8x32xf32>
    %103 = arith.divf %101, %102 : vector<8x32xf32>
    %104 = arith.addf %95, %8 : vector<8x32xf32>
    %105 = arith.negf %104 : vector<8x32xf32>
    %106 = math.exp %105 : vector<8x32xf32>
    %cst_41 = arith.constant 1.000000e+00 : f32
    %107 = vector.broadcast %cst_41 : f32 to vector<8x32xf32>
    %108 = arith.addf %107, %106 : vector<8x32xf32>
    %109 = arith.divf %107, %108 : vector<8x32xf32>
    %110 = arith.mulf %103, %9 : vector<8x32xf32>
    %111 = arith.addf %97, %110 : vector<8x32xf32>
    %112 = math.tanh %111 : vector<8x32xf32>
    %cst_42 = arith.constant 1.000000e+00 : f32
    %113 = vector.broadcast %cst_42 : f32 to vector<8x32xf32>
    %114 = arith.subf %113, %109 : vector<8x32xf32>
    %115 = arith.mulf %114, %112 : vector<8x32xf32>
    %116 = arith.mulf %109, %0 : vector<8x32xf32>
    %117 = arith.addf %115, %116 : vector<8x32xf32>
    %118 = arith.index_cast %c2_i32 : i32 to index
    %c0_43 = arith.constant 0 : index
    %c0_44 = arith.constant 0 : index
    %119 = vector.load %arg12[%118, %c0_43, %c0_44] : memref<4x8x32xf32, #tpu.memory_space<vmem>>, vector<1x8x32xf32>
    %120 = vector.shape_cast %119 : vector<1x8x32xf32> to vector<8x32xf32>
    %121 = vector.shape_cast %117 : vector<8x32xf32> to vector<1x8x32xf32>
    tpu.vector_store %arg12[%118, %c0_43, %c0_44], %121 {strides = array<i32>} : memref<4x8x32xf32, #tpu.memory_space<vmem>>, vector<1x8x32xf32>,
    %c3_i32 = arith.constant 3 : i32
    %c8_i32_45 = arith.constant 8 : i32
    %122 = arith.muli %c3_i32, %c8_i32_45 : i32
    %123 = tpu.assume_multiple %122, 8 : i32
    %124 = arith.index_cast %123 : i32 to index
    %c0_46 = arith.constant 0 : index
    %125 = vector.load %arg13[%124, %c0_46] : memref<32x384xf32, #tpu.memory_space<vmem>>, vector<8x32xf32>
    %126 = arith.index_cast %123 : i32 to index
    %c128_47 = arith.constant 128 : index
    %127 = vector.load %arg13[%126, %c128_47] : memref<32x384xf32, #tpu.memory_space<vmem>>, vector<8x32xf32>
    %128 = arith.index_cast %123 : i32 to index
    %c256_48 = arith.constant 256 : index
    %129 = vector.load %arg13[%128, %c256_48] : memref<32x384xf32, #tpu.memory_space<vmem>>, vector<8x32xf32>
    %130 = arith.addf %125, %7 : vector<8x32xf32>
    %131 = arith.negf %130 : vector<8x32xf32>
    %132 = math.exp %131 : vector<8x32xf32>
    %cst_49 = arith.constant 1.000000e+00 : f32
    %133 = vector.broadcast %cst_49 : f32 to vector<8x32xf32>
    %134 = arith.addf %133, %132 : vector<8x32xf32>
    %135 = arith.divf %133, %134 : vector<8x32xf32>
    %136 = arith.addf %127, %8 : vector<8x32xf32>
    %137 = arith.negf %136 : vector<8x32xf32>
    %138 = math.exp %137 : vector<8x32xf32>
    %cst_50 = arith.constant 1.000000e+00 : f32
    %139 = vector.broadcast %cst_50 : f32 to vector<8x32xf32>
    %140 = arith.addf %139, %138 : vector<8x32xf32>
    %141 = arith.divf %139, %140 : vector<8x32xf32>
    %142 = arith.mulf %135, %9 : vector<8x32xf32>
    %143 = arith.addf %129, %142 : vector<8x32xf32>
    %144 = math.tanh %143 : vector<8x32xf32>
    %cst_51 = arith.constant 1.000000e+00 : f32
    %145 = vector.broadcast %cst_51 : f32 to vector<8x32xf32>
    %146 = arith.subf %145, %141 : vector<8x32xf32>
    %147 = arith.mulf %146, %144 : vector<8x32xf32>
    %148 = arith.mulf %141, %0 : vector<8x32xf32>
    %149 = arith.addf %147, %148 : vector<8x32xf32>
    %150 = arith.index_cast %c3_i32 : i32 to index
    %c0_52 = arith.constant 0 : index
    %c0_53 = arith.constant 0 : index
    %151 = vector.load %arg12[%150, %c0_52, %c0_53] : memref<4x8x32xf32, #tpu.memory_space<vmem>>, vector<1x8x32xf32>
    %152 = vector.shape_cast %151 : vector<1x8x32xf32> to vector<8x32xf32>
    %153 = vector.shape_cast %149 : vector<8x32xf32> to vector<1x8x32xf32>
    tpu.vector_store %arg12[%150, %c0_52, %c0_53], %153 {strides = array<i32>} : memref<4x8x32xf32, #tpu.memory_space<vmem>>, vector<1x8x32xf32>,
    %c4_i32 = arith.constant 4 : i32
    %c0_54 = arith.constant 0 : index
    %c0_55 = arith.constant 0 : index
    %c0_56 = arith.constant 0 : index
    %154 = vector.load %arg12[%c0_54, %c0_55, %c0_56] : memref<4x8x32xf32, #tpu.memory_space<vmem>>, vector<4x8x32xf32>
    %c0_57 = arith.constant 0 : index
    %c0_58 = arith.constant 0 : index
    %155 = vector.load %arg9[%c0_57, %c0_58] : memref<1x32xf32, #tpu.memory_space<vmem>>, vector<1x32xf32>
    %156 = vector.shape_cast %155 : vector<1x32xf32> to vector<1x1x32xf32>
    %157 = vector.broadcast %156 : vector<1x1x32xf32> to vector<4x8x32xf32>
    %158 = arith.mulf %154, %157 : vector<4x8x32xf32>
    %cst_59 = arith.constant dense<0.000000e+00> : vector<4x8xf32>
    %159 = vector.multi_reduction <add>, %158, %cst_59 [2] : vector<4x8x32xf32> to vector<4x8xf32>
    %c0_60 = arith.constant 0 : index
    %160 = memref.load %arg10[%c0_60] : memref<1xf32, #tpu.memory_space<smem>>
    %161 = vector.broadcast %160 : f32 to vector<4x8xf32>
    %162 = arith.addf %159, %161 : vector<4x8xf32>
    %c0_61 = arith.constant 0 : index
    %c0_62 = arith.constant 0 : index
    %163 = vector.load %arg11[%c0_61, %c0_62] : memref<4x8xf32, #tpu.memory_space<vmem>>, vector<4x8xf32>
    tpu.vector_store %arg11[%c0_61, %c0_62], %162 {strides = array<i32>} : memref<4x8xf32, #tpu.memory_space<vmem>>, vector<4x8xf32>,
    return
  }
  func.func @transform_0(%arg0: i32) -> (i32, i32, i32) {
    %c0_i32 = arith.constant 0 : i32
    %c0_i32_0 = arith.constant 0 : i32
    %c0_i32_1 = arith.constant 0 : i32
    return %c0_i32, %arg0, %c0_i32_0 : i32, i32, i32
  }
  func.func @transform_1(%arg0: i32) -> (i32, i32) {
    %c0_i32 = arith.constant 0 : i32
    %c0_i32_0 = arith.constant 0 : i32
    return %arg0, %c0_i32 : i32, i32
  }
  func.func @transform_2(%arg0: i32) -> (i32, i32) {
    %c0_i32 = arith.constant 0 : i32
    %c0_i32_0 = arith.constant 0 : i32
    %c0_i32_1 = arith.constant 0 : i32
    return %c0_i32, %c0_i32_0 : i32, i32
  }
  func.func @transform_3(%arg0: i32) -> (i32, i32) {
    %c0_i32 = arith.constant 0 : i32
    %c0_i32_0 = arith.constant 0 : i32
    %c0_i32_1 = arith.constant 0 : i32
    return %c0_i32, %c0_i32_0 : i32, i32
  }
  func.func @transform_4(%arg0: i32) -> (i32, i32) {
    %c0_i32 = arith.constant 0 : i32
    %c0_i32_0 = arith.constant 0 : i32
    %c0_i32_1 = arith.constant 0 : i32
    return %c0_i32, %c0_i32_0 : i32, i32
  }
  func.func @transform_5(%arg0: i32) -> (i32, i32) {
    %c0_i32 = arith.constant 0 : i32
    %c0_i32_0 = arith.constant 0 : i32
    %c0_i32_1 = arith.constant 0 : i32
    return %c0_i32, %c0_i32_0 : i32, i32
  }
  func.func @transform_6(%arg0: i32) -> (i32, i32) {
    %c0_i32 = arith.constant 0 : i32
    %c0_i32_0 = arith.constant 0 : i32
    %c0_i32_1 = arith.constant 0 : i32
    return %c0_i32, %c0_i32_0 : i32, i32
  }
  func.func @transform_7(%arg0: i32) -> (i32, i32) {
    %c0_i32 = arith.constant 0 : i32
    %c0_i32_0 = arith.constant 0 : i32
    %c0_i32_1 = arith.constant 0 : i32
    return %c0_i32, %c0_i32_0 : i32, i32
  }
  func.func @transform_8(%arg0: i32) -> (i32, i32) {
    %c0_i32 = arith.constant 0 : i32
    %c0_i32_0 = arith.constant 0 : i32
    %c0_i32_1 = arith.constant 0 : i32
    return %c0_i32, %c0_i32_0 : i32, i32
  }
  func.func @transform_9(%arg0: i32) -> i32 {
    %c0_i32 = arith.constant 0 : i32
    %c0_i32_0 = arith.constant 0 : i32
    return %c0_i32 : i32
  }
  func.func @transform_10(%arg0: i32) -> (i32, i32) {
    %c0_i32 = arith.constant 0 : i32
    %c0_i32_0 = arith.constant 0 : i32
    return %c0_i32, %arg0 : i32, i32
  }
  func.func @transform_11(%arg0: i32) -> (i32, i32, i32) {
    %c0_i32 = arith.constant 0 : i32
    %c0_i32_0 = arith.constant 0 : i32
    %c0_i32_1 = arith.constant 0 : i32
    return %c0_i32, %arg0, %c0_i32_0 : i32, i32, i32
  }
}

</mosaic_0001>

<bundles_post_ra>
// kernel: tpu_custom_call.1
= control target key start
LH: loop header
LB: loop body
LE: loop exit
PB: predicated region body
PF: predicated region fallthrough
CT: control target
= control target key end

     0   :  { %18 = vsyncpa [#allocation5], 0  ;;  %s1221_s0 = inlined_call_operand.hbm [shape: bf16[4,8,16], index: 0, kind: input, shape index: {}]   ;;  %s1222_s1 = inlined_call_operand.hbm [shape: f32[8,32], index: 1, kind: input, shape index: {}]   ;;  %s1223_s2 = inlined_call_operand.vmem [shape: bf16[16,32], index: 2, kind: input, shape index: {}]   ;;  %s1224_s3 = inlined_call_operand.vmem [shape: f32[1,32], index: 3, kind: input, shape index: {}]   ;;  %s1225_s4 = inlined_call_operand.hbm [shape: bf16[32,384], index: 4, kind: input, shape index: {}]   ;;  %s1226_s5 = inlined_call_operand.hbm [shape: bf16[32,384], index: 5, kind: input, shape index: {}]   ;;  %s1227_s6 = inlined_call_operand.vmem [shape: f32[1,384], index: 6, kind: input, shape index: {}]   ;;  %s1228_s7 = inlined_call_operand.vmem [shape: f32[1,384], index: 7, kind: input, shape index: {}]   ;;  %s1229_s8 = inlined_call_operand.vmem [shape: f32[1,32], index: 8, kind: input, shape index: {}]   ;;  %s1230_s9 = inlined_call_operand.<no memory space> [shape: f32[1], index: 9, kind: input, shape index: {}]   ;;  %s1231_s10 = inlined_call_operand.hbm [shape: f32[4,8], index: 10, kind: output, shape index: {0}]   ;;  %s1232_s11 = inlined_call_operand.hbm [shape: f32[4,8,32], index: 11, kind: output, shape index: {1}]  }
   0x1   :  { %19 = vsyncpa [#allocation8], 0 }
   0x2   :  { %20 = vsyncpa [#allocation11], 0 }
   0x3   :  { %21 = vsyncpa [#allocation6], 0 }
   0x4   :  { %22 = vsyncpa [#allocation14], 0  ;;  %s1002_s17 = smov [#allocation7]   ;;  %s1003_s19 = smov [#allocation4]  }
   0x5   :  { %s41_s18 = sshll.u32 %s1002_s17, 4  ;;  %s28_s20 = sshll.u32 %s1003_s19, 4  ;;  %s42_s18 = int_to_ptr.vmem [resolvable:$true] %s41_s18  ;;  %s1077_s20 = int_to_ptr.vmem [resolvable:$true] %s28_s20 }
   0x6   :  { %s860_s23 = scalar_lea.hbm %s1222_s1, 128 }
   0x7   :  { %p861_p0 = scmp.ne.s32.totalorder %s1222_s1, %s860_s23  ;;  %p864_p1 = scmp.lt.u32.totalorder %s860_s23, %s1222_s1 }
   0x9   :  { %p866_p2 = pnand %p864_p1, %p861_p0 }
   0xb   :  { %869 = shalt.err (!%p866_p2)
}
   0xc   :  { %s870_s28 = scalar_lea.vmem %s42_s18, 128  ;;  %p875_p4 = scmp.lt.s32.totalorder %s42_s18, %s42_s18 }
   0xd   :  { %p871_p3 = scmp.ne.s32.totalorder %s42_s18, %s870_s28  ;;  %p876_p5 = scmp.lt.s32.totalorder %s870_s28, %s870_s28 }
   0xf   :  { %p877_p6 = por %p876_p5, %p875_p4 }
  0x11   :  { %p878_p7 = pnand %p877_p6, %p871_p3 }
  0x13   :  { %881 = shalt.err (!%p878_p7)
}
  0x14   :  { %44 = dma.hbm_to_vmem [thread:$0]  %s1222_s1, 128, %s42_s18, [#allocation8]  }
  0x15   :  { %s882_s14 = scalar_lea.hbm %s1221_s0, 256 }
  0x16   :  { %p883_p8 = scmp.ne.s32.totalorder %s1221_s0, %s882_s14  ;;  %p886_p9 = scmp.lt.u32.totalorder %s882_s14, %s1221_s0 }
  0x18   :  { %p888_p10 = pnand %p886_p9, %p883_p8 }
  0x1a   :  { %891 = shalt.err (!%p888_p10)
}
  0x1b   :  { %s892_s21 = scalar_lea.vmem %s1077_s20, 256  ;;  %p897_p12 = scmp.lt.s32.totalorder %s1077_s20, %s1077_s20 }
  0x1c   :  { %p893_p11 = scmp.ne.s32.totalorder %s1077_s20, %s892_s21  ;;  %p898_p13 = scmp.lt.s32.totalorder %s892_s21, %s892_s21 }
  0x1e   :  { %p899_p0 = por %p898_p13, %p897_p12 }
  0x20   :  { %p900_p1 = pnand %p899_p0, %p893_p11 }
  0x22   :  { %903 = shalt.err (!%p900_p1)
}
  0x23   :  { %s1004_s1 = smov 64   ;;  %s1005_s18 = smov 4  }
  0x24   :  { %34 = dma.hbm_to_vmem [thread:$0]  %s1221_s0, 256, %s1077_s20, [#allocation5], %s1004_s1, %s1004_s1, %s1005_s18  }
  0x25   :  { %s1006_s24 = smov [#allocation9]   ;;  %s904_s28 = scalar_lea.hbm %s1225_s4, 768 }
  0x26   :  { %s54_s25 = sshll.u32 %s1006_s24, 4  ;;  %p905_p2 = scmp.ne.s32.totalorder %s1225_s4, %s904_s28  ;;  %s55_s25 = int_to_ptr.vmem [resolvable:$true] %s54_s25 }
  0x27   :  { %p908_p3 = scmp.lt.u32.totalorder %s904_s28, %s1225_s4 }
  0x29   :  { %p910_p4 = pnand %p908_p3, %p905_p2 }
  0x2b   :  { %913 = shalt.err (!%p910_p4)
}
  0x2c   :  { %s914_s14 = scalar_lea.vmem %s55_s25, 768  ;;  %p919_p6 = scmp.lt.s32.totalorder %s55_s25, %s55_s25 }
  0x2d   :  { %p915_p5 = scmp.ne.s32.totalorder %s55_s25, %s914_s14  ;;  %p920_p7 = scmp.lt.s32.totalorder %s914_s14, %s914_s14 }
  0x2f   :  { %p921_p8 = por %p920_p7, %p919_p6 }
  0x31   :  { %p922_p9 = pnand %p921_p8, %p915_p5 }
  0x33   :  { %925 = shalt.err (!%p922_p9)
}
  0x34   :  { %s1007_s0 = smov 192   ;;  %s1008_s20 = smov 12  }
  0x35   :  { %60 = dma.hbm_to_vmem [thread:$0]  %s1225_s4, 768, %s55_s25, [#allocation8], %s1007_s0, %s1007_s0, %s1008_s20  }
  0x36   :  { %s1009_s17 = smov [#allocation10]   ;;  %s926_s18 = scalar_lea.hbm %s1226_s5, 768 }
  0x37   :  { %s66_s19 = sshll.u32 %s1009_s17, 4  ;;  %p927_p10 = scmp.ne.s32.totalorder %s1226_s5, %s926_s18  ;;  %s67_s19 = int_to_ptr.vmem [resolvable:$true] %s66_s19 }
  0x38   :  { %p930_p11 = scmp.lt.u32.totalorder %s926_s18, %s1226_s5 }
  0x3a   :  { %p932_p12 = pnand %p930_p11, %p927_p10 }
  0x3c   :  { %935 = shalt.err (!%p932_p12)
}
  0x3d   :  { %s936_s27 = scalar_lea.vmem %s67_s19, 768  ;;  %p941_p0 = scmp.lt.s32.totalorder %s67_s19, %s67_s19 }
  0x3e   :  { %p937_p13 = scmp.ne.s32.totalorder %s67_s19, %s936_s27  ;;  %p942_p1 = scmp.lt.s32.totalorder %s936_s27, %s936_s27 }
  0x40   :  { %p943_p2 = por %p942_p1, %p941_p0 }
  0x42   :  { %p944_p3 = pnand %p943_p2, %p937_p13 }
  0x44   :  { %947 = shalt.err (!%p944_p3)
}
  0x45   :  { %72 = dma.hbm_to_vmem [thread:$0]  %s1226_s5, 768, %s67_s19, [#allocation11], %s1007_s0, %s1007_s0, %s1008_s20  }
  0x46   :  { %992 = dma.done.wait [#allocation5], 256  }
  0x47   :  { %993 = vsyncadd [#allocation5], 4294967040 }
  0x48   :  { %994 = dma.done.wait [#allocation8], 896  }
  0x49   :  { %995 = vsyncadd [#allocation8], 4294966400 }
  0x4a   :  { %996 = dma.done.wait [#allocation11], 768  }
  0x4b   :  { %997 = vsyncadd [#allocation11], 4294966528  ;;  %v1010_v0 = vmov 0   ;;  %v801_v1 = vld [vmem:[#allocation10 + $0x4] ss:$12 sps:$4 sm:$0xff]   ;;  %v1133_v5 = vld [vmem:[#allocation7] sm:$0xff]  ;;  %v106_v42 = vlaneseq }
  0x4c   :  { %189 = vmatprep.mubr.bf16.mxu0 %v1010_v0  ;;  %v803_v2 = vld [vmem:[#allocation10] ss:$12 sps:$4 sm:$0xff]   ;;  %157 = vmatprep.subr.bf16.mxu0 %v801_v1  ;;  %v804_v3 = vld [vmem:[#allocation10 + $0x1c] ss:$12 sps:$4 sm:$0xff]   ;;  %v806_v4 = vld [vmem:[#allocation10 + $0x18] ss:$12 sps:$4 sm:$0xff]   ;;  %v95_v7 = vpack.c.bf16 %v1133_v5, %v1133_v5 }
  0x4d   :  { %158 = vmatpush1.bf16.msra.mxu0 %v803_v2  ;;  %v807_v6 = vld [vmem:[%s1223_s2] sm:$0xff]   ;;  %vm153_vm0 = vcmask 261120   ;;  %vm267_vm1 = vcmask 130048   ;;  %v809_v9 = vld [vmem:[#allocation4 + $0x8] sm:$0xff]   ;;  %v810_v10 = vld [vmem:[#allocation10 + $0x8] ss:$12 sps:$4 sm:$0xff]  }
  0x4e   :  { %159 = vmatprep.subr.bf16.mxu0 %v804_v3  ;;  %v808_v8 = vld [vmem:[#allocation4] sm:$0xff]   ;;  %v1011_v11 = vmov 0.0   ;;  %v811_v12 = vld [vmem:[#allocation10 + $0x20] ss:$12 sps:$4 sm:$0xff]   ;;  %vm1012_vm2 = vmmov 0   ;;  %v1154_v43 = vshrl.u32 %v106_v42, 7 }
  0x4f   :  { %764 = vmatprep.subr.bf16.mxu1 %v1011_v11  ;;  %768 = vmatprep.mubr.msk.bf16.mxu1 %vm1012_vm2, %v1011_v11  ;;  %v814_v13 = vld [vmem:[#allocation9 + $0x4] ss:$12 sps:$4 sm:$0xff]   ;;  %v812_v14 = vld [vmem:[#allocation9] ss:$12 sps:$4 sm:$0xff]   ;;  %v815_v15 = vld [vmem:[#allocation9 + $0x8] ss:$12 sps:$4 sm:$0xff]  }
  0x50   :  { %765 = vmatpush3.bf16.msra.mxu1 %v810_v10  ;;  %v818_v16 = vld [vmem:[#allocation9 + $0x1c] ss:$12 sps:$4 sm:$0xff]   ;;  %v816_v17 = vld [vmem:[#allocation9 + $0x18] ss:$12 sps:$4 sm:$0xff]   ;;  %v819_v18 = vld [vmem:[#allocation9 + $0x20] ss:$12 sps:$4 sm:$0xff]  }
  0x51   :  { %160 = vmatpush1.bf16.msra.mxu0 %v806_v4  ;;  %766 = vmatprep.subr.bf16.mxu1 %v1011_v11  ;;  %v729_v23 = vld [vmem:[%s1224_s3] ss:$0 sm:$0xff]  ;;  %v108_v44 = vsub.s32 0, %v1154_v43  ;;  %v112_v47 = vsub.s32 1, %v1154_v43 }
  0x52   :  { %772 = vmatprep.subr.bf16.mxu0 %v807_v6  ;;  %v104_v45 = vld [vmem:[%s1228_s7] sm:$0x7] }
  0x53   :  { %v1163_v46 = vld [vmem:[%s1227_s6] sm:$0x7]  ;;  %v109_v48 = vrot.slane %v104_v45, %v108_v44  ;;  %v113_v50 = vrot.slane %v104_v45, %v112_v47 }
  0x54   :  { %727 = vmatmul.mubr.msk.bf16.vlgmr.msra.gmra.mrb[0].mxu0 %vm153_vm0, %v95_v7  ;;  %767 = vmatpush3.bf16.msra.mxu1 %v811_v12  ;;  %v342_v49 = vrot.slane %v1163_v46, %v108_v44  ;;  %v346_v51 = vrot.slane %v1163_v46, %v112_v47 }
  0x55   :  { %773 = vmatpush3.bf16.msra.mxu0 %v807_v6  ;;  %774 = vmatprep.mubr.msk.bf16.mxu0 %vm267_vm1, %v808_v8 }
  0x56   :  { %392 = vmatprep.subr.bf16.mxu1 %v814_v13  ;;  %778 = vmatprep.subr.bf16.mxu0 %v815_v15 }
  0x57   :  { %769 = vmatmul.mubr.msk.bf16.vlgmr.msra.gmra.mrb[0].mxu1 %vm153_vm0, %v95_v7 }
  0x58   :  { %424 = vmatprep.mubr.bf16.mxu1 %v1010_v0  ;;  %393 = vmatpush1.bf16.msra.mxu1 %v812_v14 }
  0x59   :  { %394 = vmatprep.subr.bf16.mxu1 %v818_v16 }
  0x5c   :  { %775 = vmatmul.mubr.msk.bf16.vlgmr.msra.gmra.mrb[4].mxu0 %vm267_vm1, %v809_v9  ;;  %395 = vmatpush1.bf16.msra.mxu1 %v816_v17 }
  0x5d   :  { %779 = vmatpush3.bf16.msra.mxu0 %v815_v15 }
  0x5e   :  { %780 = vmatprep.subr.bf16.mxu0 %v819_v18 }
  0x61   :  { %781 = vmatpush3.bf16.msra.mxu0 %v819_v18 }
 0x127   :  { %v191_v19 = vpop.f32.mrb[0].mxu0 }
 0x128   :  { %v193_v20 = vpop.f32.mrb[1].mxu0  ;;  %v192_v53 = vadd.f32 %v191_v19, %v109_v48 }
 0x129   :  { %v195_v21 = vpop.f32.mrb[2].mxu0  ;;  %v194_v57 = vadd.f32 %v193_v20, %v113_v50 }
 0x12a   :  { %v196_v22 = vpop.f32.mrb[3].mxu0  ;;  %v1151_v38 = vpop.f32.mrb[0].mxu1 }
 0x12b   :  { %v770_v39 = vpop.f32.mrb[1].mxu1 }
 0x12c   :  { %v235_v40 = vpop.f32.mrb[2].mxu1 }
 0x12d   :  { %v771_v41 = vpop.f32.mrb[3].mxu1 }
 0x12f   :  { %v776_v24 = vpop.f32.mrb[4].mxu0 }
 0x130   :  { %v317_v25 = vadd.f32 %v776_v24, %v729_v23  ;;  %v308_v26 = vpop.f32.mrb[5].mxu0 }
 0x131   :  { %v309_v27 = vadd.f32 %v729_v23, %v308_v26  ;;  %v777_v28 = vpop.f32.mrb[6].mxu0 }
 0x132   :  { %v320_v29 = vadd.f32 %v777_v28, %v729_v23  ;;  %v311_v30 = vpop.f32.mrb[7].mxu0  ;;  %v325_v32 = vmax.f32 %v317_v25, 0.0 }
 0x133   :  { %v312_v31 = vadd.f32 %v729_v23, %v311_v30  ;;  %v323_v34 = vmax.f32 %v309_v27, 0.0 }
 0x134   :  { %v326_v33 = vmax.f32 %v320_v29, 0.0 }
 0x135   :  { %v324_v35 = vmax.f32 %v312_v31, 0.0  ;;  %v116_v31 = vsub.s32 2, %v1154_v43 }
 0x136   :  { %v328_v36 = vpack.c.bf16 %v326_v33, %v325_v32 }
 0x137   :  { %v327_v37 = vpack.c.bf16 %v324_v35, %v323_v34  ;;  %v117_v34 = vrot.slane %v104_v45, %v116_v31  ;;  %v350_v39 = vrot.slane %v1163_v46, %v116_v31 }
 0x139   :  { %741 = vmatmul.mubr.msk.bf16.vlgmr.msra.gmra.mrb[4].mxu1 %vm153_vm0, %v327_v37  ;;  %782 = vmatprep.mubr.msk.bf16.mxu0 %vm153_vm0, %v327_v37  ;;  %v233_v44 = vadd.f32 %v1151_v38, %v117_v34 }
 0x13a   :  { %783 = vmatmul.mubr.msk.bf16.vlgmr.msra.gmra.mrb[8].mxu0 %vm153_vm0, %v328_v36  ;;  %434 = vmatprep.mubr.bf16.mxu1 %v1010_v0 }
 0x141   :  { %742 = vmatmul.mubr.msk.bf16.gmra.mrb[8].mxu1 %vm153_vm0, %v328_v36 }
 0x20c   :  { %v426_v52 = vpop.f32.mrb[4].mxu1 }
 0x20d   :  { %v427_v54 = vadd.f32 %v426_v52, %v342_v49  ;;  %v428_v55 = vpop.f32.mrb[5].mxu1  ;;  %v1168_v56 = vpop.f32.mrb[8].mxu0 }
 0x20e   :  { %v429_v58 = vadd.f32 %v428_v55, %v346_v51  ;;  %v430_v59 = vpop.f32.mrb[6].mxu1  ;;  %v479_v60 = vpop.f32.mrb[9].mxu0  ;;  %v488_v38 = vadd.f32 %v1168_v56, %v350_v39 }
 0x20f   :  { %v512_v61 = vadd.f32 %v427_v54, %v192_v53  ;;  %v431_v62 = vadd.f32 %v430_v59, %v342_v49  ;;  %v432_v63 = vpop.f32.mrb[7].mxu1  ;;  %v1170_v0 = vpop.f32.mrb[10].mxu0  ;;  %v480_v50 = vadd.f32 %v479_v60, %v350_v39 }
 0x210   :  { %v519_v1 = vadd.f32 %v429_v58, %v194_v57  ;;  %v433_v2 = vadd.f32 %v432_v63, %v346_v51  ;;  %v482_v3 = vpop.f32.mrb[11].mxu0  ;;  %v491_v60 = vadd.f32 %v1170_v0, %v350_v39 }
 0x211   :  { %v745_v4 = vmul.f32 -1.442695, %v512_v61  ;;  %v540_v6 = vadd.f32 %v431_v62, %v192_v53  ;;  %v483_v45 = vadd.f32 %v482_v3, %v350_v39 }
 0x212   :  { %v547_v7 = vadd.f32 %v433_v2, %v194_v57  ;;  %v746_v12 = vmul.f32 -1.442695, %v519_v1 }
 0x213   :  { %820 = vpow2.f32 %v745_v4  ;;  %v747_v8 = vmul.f32 -1.442695, %v540_v6 }
 0x214   :  { %v436_v9 = vpop.f32.mrb[8].mxu1  ;;  %v748_v18 = vmul.f32 -1.442695, %v547_v7 }
 0x215   :  { %822 = vpow2.f32 %v747_v8  ;;  %v437_v10 = vadd.f32 %v436_v9, %v342_v49  ;;  %v438_v11 = vpop.f32.mrb[9].mxu1 }
 0x216   :  { %v439_v13 = vadd.f32 %v438_v11, %v346_v51  ;;  %v440_v14 = vpop.f32.mrb[10].mxu1  ;;  %824 = vpow2.f32 %v746_v12 }
 0x217   :  { %v569_v15 = vadd.f32 %v437_v10, %v192_v53  ;;  %v441_v16 = vadd.f32 %v440_v14, %v342_v49  ;;  %v442_v17 = vpop.f32.mrb[11].mxu1 }
 0x218   :  { %v576_v19 = vadd.f32 %v439_v13, %v194_v57  ;;  %v443_v20 = vadd.f32 %v442_v17, %v346_v51 }
 0x219   :  { %v749_v21 = vmul.f32 -1.442695, %v569_v15  ;;  %v598_v22 = vadd.f32 %v441_v16, %v192_v53 }
 0x21a   :  { %v605_v23 = vadd.f32 %v443_v20, %v194_v57  ;;  %v750_v26 = vmul.f32 -1.442695, %v576_v19 }
 0x21b   :  { %826 = vpow2.f32 %v749_v21  ;;  %v751_v24 = vmul.f32 -1.442695, %v598_v22  ;;  %v753_v22 = vld [vmem:[%s1229_s8] ss:$0 sm:$0xff]  ;;  %s1013_s8 = smov [#allocation13]  }
 0x21c   :  { %828 = vpow2.f32 %v748_v18  ;;  %v752_v30 = vmul.f32 -1.442695, %v605_v23  ;;  %s700_s14 = sshll.u32 %s1013_s8, 4  ;;  %s701_s14 = int_to_ptr.vmem [resolvable:$true] %s700_s14 }
 0x21d   :  { %v821_v25 = vpop.eup %820  ;;  %830 = vpow2.f32 %v751_v24  ;;  %s948_s0 = scalar_lea.vmem %s701_s14, 512  ;;  %p953_p5 = scmp.lt.s32.totalorder %s701_s14, %s701_s14 }
 0x21e   :  { %v516_v27 = vadd.f32 1.0, %v821_v25  ;;  %p949_p4 = scmp.ne.s32.totalorder %s701_s14, %s948_s0  ;;  %p954_p6 = scmp.lt.s32.totalorder %s948_s0, %s948_s0 }
 0x21f   :  { %v823_v28 = vpop.eup %822 }
 0x220   :  { %832 = vrcp.f32 %v516_v27  ;;  %v544_v29 = vadd.f32 1.0, %v823_v28  ;;  %v825_v32 = vpop.eup %824  ;;  %p955_p7 = por %p954_p6, %p953_p5 }
 0x221   :  { %834 = vpow2.f32 %v750_v26  ;;  %v523_v40 = vadd.f32 1.0, %v825_v32 }
 0x222   :  { %836 = vrcp.f32 %v544_v29  ;;  %p956_p8 = pnand %p955_p7, %p949_p4 }
 0x223   :  { %838 = vpow2.f32 %v752_v30 }
 0x225   :  { %v827_v33 = vpop.eup %826 }
 0x226   :  { %v829_v35 = vpop.eup %828  ;;  %v573_v36 = vadd.f32 1.0, %v827_v33 }
 0x227   :  { %v831_v37 = vpop.eup %830  ;;  %v551_v47 = vadd.f32 1.0, %v829_v35 }
 0x228   :  { %840 = vrcp.f32 %v573_v36  ;;  %v602_v41 = vadd.f32 1.0, %v831_v37 }
 0x22a   :  { %v833_v48 = vpop.eup %832  ;;  %842 = vrcp.f32 %v602_v41 }
 0x22b   :  { %v835_v49 = vpop.eup %834  ;;  %844 = vrcp.f32 %v523_v40  ;;  %v526_v51 = vmul.f32 %v833_v48, %v233_v44 }
 0x22c   :  { %v837_v52 = vpop.eup %836  ;;  %846 = vrcp.f32 %v551_v47  ;;  %v580_v57 = vadd.f32 1.0, %v835_v49 }
 0x22d   :  { %v527_v53 = vadd.f32 %v526_v51, %v480_v50  ;;  %v554_v54 = vmul.f32 %v837_v52, %v233_v44  ;;  %v839_v55 = vpop.eup %838 }
 0x22e   :  { %v609_v58 = vadd.f32 1.0, %v839_v55 }
 0x22f   :  { %848 = vtanh.f32 %v527_v53  ;;  %v555_v46 = vadd.f32 %v554_v54, %v483_v45 }
 0x231   :  { %850 = vtanh.f32 %v555_v46 }
 0x232   :  { %v841_v59 = vpop.eup %840  ;;  %852 = vrcp.f32 %v580_v57 }
 0x233   :  { %v583_v61 = vmul.f32 %v841_v59, %v233_v44  ;;  %854 = vrcp.f32 %v609_v58 }
 0x234   :  { %v843_v62 = vpop.eup %842 }
 0x235   :  { %v845_v63 = vpop.eup %844  ;;  %v584_v1 = vadd.f32 %v583_v61, %v488_v38  ;;  %v612_v2 = vmul.f32 %v843_v62, %v233_v44 }
 0x236   :  { %v847_v3 = vpop.eup %846  ;;  %v529_v6 = vsub.f32 1.0, %v845_v63  ;;  %v531_v8 = vmul.f32 %v845_v63, %v1133_v5 }
 0x237   :  { %856 = vtanh.f32 %v584_v1  ;;  %v613_v4 = vadd.f32 %v612_v2, %v491_v60  ;;  %v557_v10 = vsub.f32 1.0, %v847_v3  ;;  %v559_v12 = vmul.f32 %v847_v3, %v1133_v5 }
 0x239   :  { %v849_v7 = vpop.eup %848  ;;  %858 = vtanh.f32 %v613_v4 }
 0x23a   :  { %v530_v9 = vmul.f32 %v849_v7, %v529_v6 }
 0x23b   :  { %v851_v56 = vpop.eup %850 }
 0x23c   :  { %v532_v11 = vadd.f32 %v531_v8, %v530_v9  ;;  %v558_v13 = vmul.f32 %v851_v56, %v557_v10  ;;  %v853_v14 = vpop.eup %852 }
 0x23d   :  { %v855_v15 = vpop.eup %854  ;;  %v586_v16 = vsub.f32 1.0, %v853_v14  ;;  %v588_v19 = vmul.f32 %v853_v14, %v1133_v5 }
 0x23e   :  { %533 = vst.msk [vmem:[#allocation13] sm:$0xff] %vm153_vm0, %v532_v11  ;;  %v560_v0 = vadd.f32 %v559_v12, %v558_v13  ;;  %v615_v20 = vsub.f32 1.0, %v855_v15  ;;  %v617_v25 = vmul.f32 %v855_v15, %v1133_v5 }
 0x240   :  { %562 = vst.msk [vmem:[#allocation13 + $0x8] sm:$0xff] %vm153_vm0, %v560_v0 }
 0x241   :  { %v857_v17 = vpop.eup %856 }
 0x242   :  { %v587_v18 = vmul.f32 %v857_v17, %v586_v16 }
 0x243   :  { %v859_v21 = vpop.eup %858 }
 0x244   :  { %v589_v23 = vadd.f32 %v588_v19, %v587_v18  ;;  %v616_v24 = vmul.f32 %v859_v21, %v615_v20 }
 0x245   :  { %v621_v26 = vld [vmem:[#allocation13] sm:$0xff] }
 0x246   :  { %591 = vst.msk [vmem:[#allocation13 + $0x10] sm:$0xff] %vm153_vm0, %v589_v23  ;;  %v618_v27 = vadd.f32 %v617_v25, %v616_v24  ;;  %v632_v28 = vmul.f32 %v753_v22, %v621_v26 }
 0x247   :  { %v622_v29 = vld [vmem:[#allocation13 + $0x8] sm:$0xff] }
 0x248   :  { %620 = vst.msk [vmem:[#allocation13 + $0x18] sm:$0xff] %vm153_vm0, %v618_v27  ;;  %v636_v30 = vsel %vm153_vm0, %v632_v28, 0.0  ;;  %v633_v31 = vmul.f32 %v753_v22, %v622_v29 }
 0x249   :  { %637 = vadd.xlane.f32.xlu0 %v636_v30 }
 0x24a   :  { %v639_v32 = vsel %vm153_vm0, %v633_v31, 0.0 }
 0x24d   :  { %640 = vadd.xlane.f32.xlu0 %v639_v32  ;;  %v623_v33 = vld [vmem:[#allocation13 + $0x10] sm:$0xff] }
 0x24e   :  { %v634_v34 = vmul.f32 %v753_v22, %v623_v33 }
 0x24f   :  { %v624_v35 = vld [vmem:[#allocation13 + $0x18] sm:$0xff] }
 0x250   :  { %v642_v5 = vsel %vm153_vm0, %v634_v34, 0.0  ;;  %v635_v36 = vmul.f32 %v753_v22, %v624_v35 }
 0x251   :  { %643 = vadd.xlane.f32.xlu1 %v642_v5 }
 0x252   :  { %v645_v37 = vsel %vm153_vm0, %v635_v36, 0.0 }
 0x255   :  { %646 = vadd.xlane.f32.xlu1 %v645_v37 }
 0x256   :  { %959 = shalt.err (!%p956_p8)
}
 0x257   :  { %s960_s16 = scalar_lea.hbm %s1232_s11, 512 }
 0x258   :  { %p961_p9 = scmp.ne.s32.totalorder %s1232_s11, %s960_s16  ;;  %p964_p10 = scmp.lt.u32.totalorder %s960_s16, %s1232_s11 }
 0x25a   :  { %p966_p11 = pnand %p964_p10, %p961_p9 }
 0x25c   :  { %969 = shalt.err (!%p966_p11)
}
 0x25d   :  { %s1014_s18 = smov 128   ;;  %s1015_s22 = smov 8   ;;  %v659_v41 = vand.u32 127, %v106_v42  ;;  %v649_v44 = vstv %s1230_s9  ;;  %vm676_vm3 = vcmask 1041409   ;;  %vm678_vm4 = vcmask 1042434  }
 0x25e   :  { %706 = dma.vmem_to_hbm [thread:$0]  %s701_s14, 512, %s1232_s11, [#allocation14], %s1014_s18, %s1014_s18, %s1015_s22   ;;  %vm680_vm5 = vcmask 1043459   ;;  %vm683_vm6 = vcmask 60416  }
 0x25f   :  { %v662_v49 = vsub.s32 %v659_v41, %v1154_v43  ;;  %s1016_s11 = smov [#allocation12]  }
 0x260   :  { %s691_s4 = sshll.u32 %s1016_s11, 4  ;;  %s692_s4 = int_to_ptr.vmem [resolvable:$true] %s691_s4 }
 0x261   :  { %s970_s9 = scalar_lea.vmem %s692_s4, 64  ;;  %p975_p13 = scmp.lt.s32.totalorder %s692_s4, %s692_s4 }
 0x262   :  { %p971_p12 = scmp.ne.s32.totalorder %s692_s4, %s970_s9  ;;  %p976_p0 = scmp.lt.s32.totalorder %s970_s9, %s970_s9 }
 0x264   :  { %p977_p1 = por %p976_p0, %p975_p13 }
 0x266   :  { %p978_p2 = pnand %p977_p1, %p971_p12 }
 0x2d6   :  { %v638_v39 = vpop.xlane.xlu0 %637 }
 0x2d7   :  { %v650_v50 = vadd.f32 %v649_v44, %v638_v39 }
 0x2d9   :  { %v663_v54 = vrot.slane %v650_v50, %v662_v49 }
 0x2da   :  { %v641_v40 = vpop.xlane.xlu0 %640 }
 0x2db   :  { %v651_v47 = vadd.f32 %v649_v44, %v641_v40 }
 0x2dd   :  { %v667_v52 = vrot.slane %v651_v47, %v662_v49 }
 0x2de   :  { %v644_v48 = vpop.xlane.xlu1 %643 }
 0x2df   :  { %v652_v51 = vadd.f32 %v649_v44, %v644_v48  ;;  %v677_v42 = vsel %vm676_vm3, %v667_v52, %v663_v54 }
 0x2e1   :  { %v671_v53 = vrot.slane %v652_v51, %v662_v49 }
 0x2e2   :  { %v647_v45 = vpop.xlane.xlu1 %646 }
 0x2e3   :  { %v653_v55 = vadd.f32 %v649_v44, %v647_v45  ;;  %v679_v57 = vsel %vm678_vm4, %v671_v53, %v677_v42 }
 0x2e5   :  { %v675_v46 = vrot.slane %v653_v55, %v662_v49 }
 0x2e7   :  { %v681_v58 = vsel %vm680_vm5, %v675_v46, %v679_v57 }
 0x2e8   :  { %684 = vst.msk [vmem:[#allocation12] sm:$0xf] %vm683_vm6, %v681_v58 }
 0x2e9   :  { %981 = shalt.err (!%p978_p2)
}
 0x2ea   :  { %s982_s5 = scalar_lea.hbm %s1231_s10, 64 }
 0x2eb   :  { %p983_p3 = scmp.ne.s32.totalorder %s1231_s10, %s982_s5  ;;  %p986_p4 = scmp.lt.u32.totalorder %s982_s5, %s1231_s10 }
 0x2ed   :  { %p988_p5 = pnand %p986_p4, %p983_p3 }
 0x2ef   :  { %991 = shalt.err (!%p988_p5)
}
 0x2f0   :  { %694 = dma.vmem_to_hbm [thread:$0]  %s692_s4, 64, %s1231_s10, [#allocation6]  }
 0x2f1   :  { %998 = dma.done.wait [#allocation6], 64  }
 0x2f2   :  { %999 = vsyncadd [#allocation6], 4294967232 }
 0x2f3   :  { %1000 = dma.done.wait [#allocation14], 512  }
 0x2f4   :  { %1001 = vsyncadd [#allocation14], 4294966784 }
 0x2f5   :  { %713 = vsyncpa [#allocation5], 1 }
 0x2f6   :  { %714 = vsyncpa [#allocation8], 1 }
 0x2f7   :  { %715 = vsyncpa [#allocation11], 1 }
 0x2f8   :  { %716 = vsyncpa [#allocation6], 1 }
 0x2f9   :  { %717 = vsyncpa [#allocation14], 1 }

</bundles_post_ra>
